<compile_context>
chip_gen: v5e
topology: v5e:2x2
jax: 0.10.0
libtpu: 0.0.40
codegen_flags: <defaults>
</compile_context>

<pallas_src>
import numpy as np
import jax
import jax.numpy as jnp
from jax import lax
from jax.experimental import pallas as pl
from jax.experimental.pallas import tpu as pltpu


def _round_up(n, m):
    return ((n + m - 1) // m) * m


def _row_align(dtype):
    # native sublane granule: 8 for f32, 16 for bf16
    return max(8, 32 // jnp.dtype(dtype).itemsize)


# --------------------------------------------------------------------------
# Kernel 1: fused (feature-encoder o input-gate) projection, one matmul.
#   node_gates = x @ W_fused + b_fused        (N, 3H)
# --------------------------------------------------------------------------
def _node_gates_kernel(x_ref, w_ref, b_ref, o_ref):
    acc = jnp.dot(x_ref[...], w_ref[...], preferred_element_type=jnp.float32)
    o_ref[...] = (acc + b_ref[...]).astype(o_ref.dtype)


def encode_node_gates(x, w_fused, b_fused, compute_dtype, tile_m_cap=512):
    """x: (N, D_in). w_fused: (D_in, 3H). b_fused: (1, 3H) f32.
    Returns node_gates (N_pad, 3H) in compute_dtype (rows >= N are junk and
    are never gathered)."""
    n, d_in = x.shape
    gw = w_fused.shape[1]
    align = _row_align(compute_dtype)

    n_pad0 = _round_up(max(n, 1), align)
    tile_m = min(tile_m_cap, _round_up(pl.cdiv(n_pad0, 2), align))
    n_pad = _round_up(n_pad0, tile_m)

    x_c = x.astype(compute_dtype)
    if n_pad != n:
        x_c = jnp.pad(x_c, ((0, n_pad - n), (0, 0)))

    dbytes = jnp.dtype(compute_dtype).itemsize
    need = 2 * (tile_m * d_in + d_in * gw + tile_m * gw) * dbytes + 2 * gw * 4
    vmem_limit = int(min(64 * 2**20, max(16 * 2**20, 2 * need + 2 * 2**20)))

    return pl.pallas_call(
        _node_gates_kernel,
        out_shape=jax.ShapeDtypeStruct((n_pad, gw), compute_dtype),
        grid_spec=pltpu.PrefetchScalarGridSpec(
            num_scalar_prefetch=0,
            grid=(n_pad // tile_m,),
            in_specs=[
                pl.BlockSpec((tile_m, d_in), lambda i: (i, 0)),
                pl.BlockSpec((d_in, gw), lambda i: (0, 0)),
                pl.BlockSpec((1, gw), lambda i: (0, 0)),
            ],
            out_specs=pl.BlockSpec((tile_m, gw), lambda i: (i, 0)),
        ),
        compiler_params=pltpu.CompilerParams(
            dimension_semantics=("parallel",),
            vmem_limit_bytes=vmem_limit,
        ),
    )(x_c, w_fused.astype(compute_dtype), b_fused)


# --------------------------------------------------------------------------
# Kernel 2: GRU recurrence over packed lanes.
#   Lane layout of one row: [ r | z | n ] slabs, each GS = P*Hslot wide,
#   with P independent walks occupying disjoint Hslot sub-slices (block-
#   diagonal Wh -> no cross-walk leakage).
#   gi already contains all input-side + reset/update hidden biases;
#   bhn = b_hh_n is added to gh_n inside r*(...) as per the GRU definition.
#   Grid: (batch tiles "parallel", time chunks "arbitrary");
#   h lives in a VMEM scratch accumulator across time chunks.
# --------------------------------------------------------------------------
def _gru_kernel(gates_ref, wh_ref, bhn_ref, out_ref, h_ref):
    tc = pl.program_id(1)

    @pl.when(tc == 0)
    def _():
        h_ref[...] = jnp.zeros_like(h_ref)

    gs = out_ref.shape[-1]
    t_chunk = gates_ref.shape[0]
    wh = wh_ref[...]
    bhn = jnp.broadcast_to(bhn_ref[...], out_ref.shape)  # hoisted out of loop

    def step(t, h):
        gh = jnp.dot(h.astype(wh.dtype), wh,
                     preferred_element_type=jnp.float32)          # (B, 3GS)
        # r/z first (retire the first 2GS lanes before forming n).
        rz = jax.nn.sigmoid(
            gates_ref[t, :, :2 * gs].astype(jnp.float32) + gh[:, :2 * gs])
        r = rz[:, :gs]
        z = rz[:, gs:]
        n = jnp.tanh(gates_ref[t, :, 2 * gs:].astype(jnp.float32)
                     + r * (gh[:, 2 * gs:] + bhn))
        return (1.0 - z) * n + z * h

    h = lax.fori_loop(0, t_chunk, step, h_ref[...], unroll=True)
    h_ref[...] = h

    @pl.when(tc == pl.num_programs(1) - 1)
    def _():
        out_ref[...] = h


def gru_final_hidden(gates_tm, wh_p, bhn, compute_dtype, tile_b, t_chunk):
    """gates_tm: (T_pad, B_rows_pad, 3GS) time-major packed input gates.
    wh_p: (GS, 3GS); bhn: (1, GS) f32.  Returns (B_rows_pad, GS) f32."""
    t_pad, b_rows_pad, gw = gates_tm.shape
    gs = gw // 3
    grid_b = b_rows_pad // tile_b
    n_tc = t_pad // t_chunk

    dbytes = jnp.dtype(compute_dtype).itemsize
    need = (2 * t_chunk * tile_b * gw * dbytes   # gates, double-buffered
            + 2 * gs * gw * dbytes               # wh
            + 2 * gw * 4                         # bhn
            + 2 * tile_b * gs * 4                # out
            + tile_b * gs * 4)                   # h scratch
    vmem_limit = int(min(64 * 2**20, max(16 * 2**20, 2 * need + 2 * 2**20)))

    return pl.pallas_call(
        _gru_kernel,
        out_shape=jax.ShapeDtypeStruct((b_rows_pad, gs), jnp.float32),
        grid_spec=pltpu.PrefetchScalarGridSpec(
            num_scalar_prefetch=0,
            grid=(grid_b, n_tc),
            in_specs=[
                pl.BlockSpec((t_chunk, tile_b, gw), lambda i, tc: (tc, i, 0)),
                pl.BlockSpec((gs, gw), lambda i, tc: (0, 0)),
                pl.BlockSpec((1, gs), lambda i, tc: (0, 0)),
            ],
            out_specs=pl.BlockSpec((tile_b, gs), lambda i, tc: (i, 0)),
            scratch_shapes=[pltpu.VMEM((tile_b, gs), jnp.float32)],
        ),
        compiler_params=pltpu.CompilerParams(
            dimension_semantics=("parallel", "arbitrary"),
            vmem_limit_bytes=vmem_limit,
        ),
    )(gates_tm, wh_p.astype(compute_dtype), bhn)


# --------------------------------------------------------------------------
# Parameter packing.
#   * Fuse feature encoder + GRU input gates + all non-candidate biases into
#     (W_fused, b_fused) acting directly on raw node features.
#   * Build a block-diagonal Wh (GS, 3GS) packing P walks per lane-row;
#     padded lanes within a slot (fallback case) stay exactly zero.
# --------------------------------------------------------------------------
def pack_params(params, hslot, p):
    fe_w = params["fe_w"]          # (H, D_in)
    fe_b = params["fe_b"]          # (H,)
    w_ih = params["gru_w_ih"]      # (3H, H), gate order r, z, n
    w_hh = params["gru_w_hh"]      # (3H, H)
    b_ih = params["gru_b_ih"]      # (3H,)
    b_hh = params["gru_b_hh"]      # (3H,)
    h = fe_w.shape[0]
    gs = p * hslot

    wi_slab = jnp.concatenate(
        [w_ih[0:h].T, w_ih[h:2 * h].T, w_ih[2 * h:3 * h].T], axis=1)  # (H, 3H)
    w_fused = fe_w.T.astype(jnp.float32) @ wi_slab                    # (D_in, 3H)
    bi_slab = jnp.concatenate([b_ih[0:h] + b_hh[0:h],
                               b_ih[h:2 * h] + b_hh[h:2 * h],
                               b_ih[2 * h:3 * h]])                    # (3H,)
    b_fused = (fe_b @ wi_slab + bi_slab).reshape(1, 3 * h).astype(jnp.float32)

    wh_p = jnp.zeros((gs, 3 * gs), jnp.float32)
    bhn = jnp.zeros((1, gs), jnp.float32)
    for g in range(3):
        w_g_t = w_hh[g * h:(g + 1) * h].T          # (H, H), already transposed
        for s in range(p):
            r0 = s * hslot
            c0 = g * gs + s * hslot
            wh_p = wh_p.at[r0:r0 + h, c0:c0 + h].set(w_g_t)
    for s in range(p):
        bhn = bhn.at[0, s * hslot:s * hslot + h].set(b_hh[2 * h:3 * h])

    return w_fused, b_fused, wh_p, bhn


# --------------------------------------------------------------------------
# Glue: deterministic random-walk sampling (host-side numpy).
# TODO(synk): data-dependent stochastic traversal has no clean Pallas
# equivalent; kept host-side.
# --------------------------------------------------------------------------
def sample_random_walks_np(edge_index, batch, num_nodes, walk_length,
                           num_walks, rng):
    src, dst = edge_index
    adj = [[] for _ in range(num_nodes)]
    for s, d in zip(src.tolist(), dst.tolist()):   # to_undirected
        adj[s].append(d)
        adj[d].append(s)
    walks, walk_batch = [], []
    batch_size = int(batch.max()) + 1
    for g in range(batch_size):
        nodes = np.nonzero(batch == g)[0]
        if nodes.size <= 1:
            continue
        if num_walks >= nodes.size:
            starts = nodes
        else:
            starts = rng.permutation(nodes)[:num_walks]
        for s0 in starts:
            walk = [int(s0)]
            cur = int(s0)
            for _ in range(walk_length - 1):
                nbrs = adj[cur]
                if len(nbrs) == 0:
                    break
                cur = int(nbrs[rng.integers(len(nbrs))])
                walk.append(cur)
            while len(walk) < walk_length:   # pad with last node
                walk.append(walk[-1])
            walks.append(walk[:walk_length])
            walk_batch.append(g)
    if len(walks) == 0:
        return (np.zeros((1, walk_length), dtype=np.int64),
                np.zeros((1,), dtype=np.int64))
    return np.asarray(walks, dtype=np.int64), np.asarray(walk_batch,
                                                         dtype=np.int64)


# --------------------------------------------------------------------------
# Full forward
# --------------------------------------------------------------------------
def explicit_random_walk_encoder_forward(params, x, edge_index, batch,
                                         walk_length, num_walks, rng,
                                         compute_dtype=jnp.bfloat16):
    num_nodes = x.shape[0]
    hidden = params["fe_w"].shape[0]

    # Lane packing: P independent walks per 128-lane gate slab when H | 128,
    # otherwise fall back to zero-padding H up to a multiple of 128.
    if hidden <= 128 and 128 % hidden == 0:
        p, hslot = 128 // hidden, hidden
    else:
        p, hslot = 1, _round_up(hidden, 128)
    gs = p * hslot
    align = _row_align(compute_dtype)

    walks_np, walk_batch_np = sample_random_walks_np(
        edge_index, batch, num_nodes, walk_length, num_walks, rng)
    # Invariant: the sampler never emits out-of-range node indices, so the
    # reference module's zero-fill branch is unreachable and the GRU input
    # bias can be folded into node_gates (correctness concern documented in
    # the review).
    assert walks_np.min() >= 0 and walks_np.max() < num_nodes
    walks = jnp.asarray(walks_np, dtype=jnp.int32)       # (B_walks, T)
    walk_batch = jnp.asarray(walk_batch_np)
    b_walks, t_len = walks.shape

    w_fused, b_fused, wh_p, bhn = pack_params(params, hslot, p)

    # 1) Per-node fused projection (Pallas kernel 1).
    node_gates = encode_node_gates(x, w_fused, b_fused, compute_dtype)
    n_pad = node_gates.shape[0]

    # 2) Tile / padding sizes for the recurrence.
    b_rows = pl.cdiv(b_walks, p)
    tile_b = min(128, _round_up(pl.cdiv(b_rows, 2), align))
    b_rows_pad = _round_up(b_rows, tile_b)
    b_pad = b_rows_pad * p

    dbytes = jnp.dtype(compute_dtype).itemsize
    t_chunk = int(max(1, min(t_len, 32,
                             (4 * 2**20) // (tile_b * 3 * gs * dbytes))))
    t_pad = _round_up(t_len, t_chunk)

    # 3) Gather input gates TIME-MAJOR directly into the packed lane layout
    #    [gate, slot, H].  Batch padding uses node index 0 (always valid,
    #    padded rows are sliced away at the end).
    idx = walks
    if b_pad != b_walks:
        idx = jnp.pad(idx, ((0, b_pad - b_walks), (0, 0)))
    idx_tm = idx.T                                            # (T, B_pad)
    g = node_gates.reshape(n_pad, 3, hidden)[idx_tm]          # (T, B_pad, 3, H)
    g = g.reshape(t_len, b_rows_pad, p, 3, hidden).transpose(0, 1, 3, 2, 4)
    if hslot != hidden:
        g = jnp.pad(g, ((0, 0), (0, 0), (0, 0), (0, 0), (0, hslot - hidden)))
    gates_tm = g.reshape(t_len, b_rows_pad, 3 * gs)
    if t_pad != t_len:
        # Identity GRU steps for time padding: large z pre-activation => z=1
        # => h unchanged.
        pad_blk = jnp.zeros((t_pad - t_len, b_rows_pad, 3 * gs),
                            gates_tm.dtype)
        pad_blk = pad_blk.at[:, :, gs:2 * gs].set(
            jnp.asarray(40.0, gates_tm.dtype))
        gates_tm = jnp.concatenate([gates_tm, pad_blk], axis=0)

    # 4) GRU recurrence (Pallas kernel 2); unpack lanes; h_n.squeeze(0).
    h_packed = gru_final_hidden(gates_tm, wh_p, bhn, compute_dtype,
                                tile_b, t_chunk)              # (B_rows_pad, GS)
    h_all = h_packed.reshape(b_rows_pad * p, hslot)
    path_encodings = h_all[:b_walks, :hidden]
    return path_encodings, walk_batch


# --------------------------------------------------------------------------
# Pure-JAX reference (for verification)
# --------------------------------------------------------------------------
def gru_ref(wf_tmajor, w_ih, w_hh, b_ih, b_hh):
    hid = wf_tmajor.shape[-1]

    def step(h, x_t):
        gi = x_t @ w_ih.T + b_ih
        gh = h @ w_hh.T + b_hh
        i_r, i_z, i_n = gi[:, :hid], gi[:, hid:2 * hid], gi[:, 2 * hid:]
        h_r, h_z, h_n = gh[:, :hid], gh[:, hid:2 * hid], gh[:, 2 * hid:]
        r = jax.nn.sigmoid(i_r + h_r)
        z = jax.nn.sigmoid(i_z + h_z)
        n = jnp.tanh(i_n + r * h_n)
        h_new = (1.0 - z) * n + z * h
        return h_new, None

    h0 = jnp.zeros((wf_tmajor.shape[1], hid), jnp.float32)
    h_fin, _ = lax.scan(step, h0, wf_tmajor)
    return h_fin


# --------------------------------------------------------------------------
if __name__ == "__main__":
    input_dim = 8
    hidden_dim = 32
    walk_length = 8
    num_walks = 4
    num_nodes = 16               # 2 graphs x 8 nodes

    key = jax.random.PRNGKey(0)
    k_x, k_fw, k_fb, k_wih, k_whh, k_bih, k_bhh = jax.random.split(key, 7)

    x = jax.random.normal(k_x, (num_nodes, input_dim), dtype=jnp.float32)

    # Two ring graphs (8 nodes each), directed edges (made undirected in glue).
    e_src, e_dst = [], []
    for gidx in range(2):
        base = gidx * 8
        for i in range(8):
            e_src.append(base + i)
            e_dst.append(base + (i + 1) % 8)
    edge_index = np.stack([np.array(e_src), np.array(e_dst)], axis=0)
    batch = np.repeat(np.arange(2), 8)

    s_fe = 1.0 / np.sqrt(input_dim)
    s_gr = 1.0 / np.sqrt(hidden_dim)
    params = {
        "fe_w": jax.random.uniform(k_fw, (hidden_dim, input_dim),
                                   minval=-s_fe, maxval=s_fe,
                                   dtype=jnp.float32),
        "fe_b": jax.random.uniform(k_fb, (hidden_dim,),
                                   minval=-s_fe, maxval=s_fe,
                                   dtype=jnp.float32),
        "gru_w_ih": jax.random.uniform(k_wih, (3 * hidden_dim, hidden_dim),
                                       minval=-s_gr, maxval=s_gr,
                                       dtype=jnp.float32),
        "gru_w_hh": jax.random.uniform(k_whh, (3 * hidden_dim, hidden_dim),
                                       minval=-s_gr, maxval=s_gr,
                                       dtype=jnp.float32),
        "gru_b_ih": jax.random.uniform(k_bih, (3 * hidden_dim,),
                                       minval=-s_gr, maxval=s_gr,
                                       dtype=jnp.float32),
        "gru_b_hh": jax.random.uniform(k_bhh, (3 * hidden_dim,),
                                       minval=-s_gr, maxval=s_gr,
                                       dtype=jnp.float32),
    }

    # Reference forward (same deterministic walks).
    rng_ref = np.random.default_rng(0)
    walks_np, walk_batch_np = sample_random_walks_np(
        edge_index, batch, num_nodes, walk_length, num_walks, rng_ref)
    x_enc_ref = x @ params["fe_w"].T + params["fe_b"]
    wf_ref = x_enc_ref[jnp.asarray(walks_np)]
    ref = gru_ref(jnp.transpose(wf_ref, (1, 0, 2)),
                  params["gru_w_ih"], params["gru_w_hh"],
                  params["gru_b_ih"], params["gru_b_hh"])

    # f32 path: tight semantic check (fusion only reassociates FP ops).
    out_f32, wb = explicit_random_walk_encoder_forward(
        params, x, edge_index, batch, walk_length, num_walks,
        np.random.default_rng(0), compute_dtype=jnp.float32)
    out_f32 = jax.block_until_ready(out_f32)
    np.testing.assert_allclose(np.asarray(out_f32), np.asarray(ref),
                               rtol=1e-4, atol=1e-4)

    # bf16-MXU path (v6e/v7x-oriented): bf16 operands, f32 gate math / state.
    out_bf16, wb2 = explicit_random_walk_encoder_forward(
        params, x, edge_index, batch, walk_length, num_walks,
        np.random.default_rng(0), compute_dtype=jnp.bfloat16)
    out_bf16 = jax.block_until_ready(out_bf16)
    np.testing.assert_allclose(np.asarray(out_bf16), np.asarray(ref),
                               rtol=5e-2, atol=5e-2)

    assert out_f32.shape == (walk_batch_np.shape[0], hidden_dim)
    assert np.array_equal(np.asarray(wb), walk_batch_np)
    print("KERNEL_OK")
</pallas_src>

<mosaic_0001>
module attributes {stable_mosaic.version = 11 : i64} {
  func.func @_node_gates_kernel(%arg0: i32, %arg1: memref<8x8xf32, #tpu.memory_space<vmem>>, %arg2: memref<8x96xf32, #tpu.memory_space<vmem>>, %arg3: memref<1x96xf32, #tpu.memory_space<vmem>>, %arg4: memref<8x96xf32, #tpu.memory_space<vmem>>) attributes {dimension_semantics = [#tpu.dimension_semantics<parallel>], iteration_bounds = array<i64: 2>, scalar_prefetch = 0 : i64, scratch_operands = 0 : i64, tpu.core_type = #tpu.core_type<tc>, window_params = [{transform_indices = @transform_0, window_bounds = array<i64: 8, 8>}, {pipeline_mode = #tpu.pipeline_mode<synchronous>, transform_indices = @transform_1, window_bounds = array<i64: 8, 96>}, {pipeline_mode = #tpu.pipeline_mode<synchronous>, transform_indices = @transform_2, window_bounds = array<i64: 1, 96>}, {transform_indices = @transform_3, window_bounds = array<i64: 8, 96>}]} {
    %c0 = arith.constant 0 : index
    %c0_0 = arith.constant 0 : index
    %0 = vector.load %arg1[%c0, %c0_0] : memref<8x8xf32, #tpu.memory_space<vmem>>, vector<8x8xf32>
    %c0_1 = arith.constant 0 : index
    %c0_2 = arith.constant 0 : index
    %1 = vector.load %arg2[%c0_1, %c0_2] : memref<8x96xf32, #tpu.memory_space<vmem>>, vector<8x96xf32>
    %cst = arith.constant dense<0.000000e+00> : vector<8x96xf32>
    %2 = tpu.matmul %0, %1, %cst {dimension_numbers = #tpu.dot_dimension_numbers<[1], [0], [0], [1], [0, 0, 1, 1], [], []>} : vector<8x8xf32>, vector<8x96xf32>, vector<8x96xf32> -> vector<8x96xf32>
    %c0_3 = arith.constant 0 : index
    %c0_4 = arith.constant 0 : index
    %3 = vector.load %arg3[%c0_3, %c0_4] : memref<1x96xf32, #tpu.memory_space<vmem>>, vector<1x96xf32>
    %4 = vector.broadcast %3 : vector<1x96xf32> to vector<8x96xf32>
    %5 = arith.addf %2, %4 : vector<8x96xf32>
    %c0_5 = arith.constant 0 : index
    %c0_6 = arith.constant 0 : index
    %6 = vector.load %arg4[%c0_5, %c0_6] : memref<8x96xf32, #tpu.memory_space<vmem>>, vector<8x96xf32>
    tpu.vector_store %arg4[%c0_5, %c0_6], %5 {strides = array<i32>} : memref<8x96xf32, #tpu.memory_space<vmem>>, vector<8x96xf32>,
    return
  }
  func.func @transform_0(%arg0: i32) -> (i32, i32) {
    %c0_i32 = arith.constant 0 : i32
    %c0_i32_0 = arith.constant 0 : i32
    return %arg0, %c0_i32 : i32, i32
  }
  func.func @transform_1(%arg0: i32) -> (i32, i32) {
    %c0_i32 = arith.constant 0 : i32
    %c0_i32_0 = arith.constant 0 : i32
    %c0_i32_1 = arith.constant 0 : i32
    return %c0_i32, %c0_i32_0 : i32, i32
  }
  func.func @transform_2(%arg0: i32) -> (i32, i32) {
    %c0_i32 = arith.constant 0 : i32
    %c0_i32_0 = arith.constant 0 : i32
    %c0_i32_1 = arith.constant 0 : i32
    return %c0_i32, %c0_i32_0 : i32, i32
  }
  func.func @transform_3(%arg0: i32) -> (i32, i32) {
    %c0_i32 = arith.constant 0 : i32
    %c0_i32_0 = arith.constant 0 : i32
    return %arg0, %c0_i32 : i32, i32
  }
}

</mosaic_0001>

<bundles_post_ra>
// kernel: tpu_custom_call.1
= control target key start
LH: loop header
LB: loop body
LE: loop exit
PB: predicated region body
PF: predicated region fallthrough
CT: control target
= control target key end

     0   :  { %8 = vsyncpa [#allocation3], 0  ;;  %s499_s0 = inlined_call_operand.vmem [shape: f32[16,8], index: 0, kind: input, shape index: {}]   ;;  %s500_s1 = inlined_call_operand.vmem [shape: f32[8,96], index: 1, kind: input, shape index: {}]   ;;  %s501_s2 = inlined_call_operand.vmem [shape: f32[1,96], index: 2, kind: input, shape index: {}]   ;;  %s502_s3 = inlined_call_operand.hbm [shape: f32[16,96], index: 3, kind: output, shape index: {}]  }
   0x1   :  { %10 = vsyncpa [#allocation3 + $0x1], 0  ;;  %s408_s12 = smov 0   ;;  %s410_s13 = smov 0  }
   0x2   :  { %s412_s14 = smov 0   ;;  %s414_s15 = smov 0  }
   0x3 LB: > { %s429_s16 = sadd.s32 4294967295, %s386_s15   ;;  %s273_s17 = sadd.s32 4294967294, %s386_s15   ;;  %s386_s15 = sphi %s414_s15, %s508_s15   ;;  %s382_s14 = sphi %s412_s14, %s507_s14   ;;  %s378_s13 = sphi %s410_s13, %s506_s13   ;;  %s374_s12 = sphi %s408_s12, %s505_s12  }
   0x4   : > { %s433_s18 = sadd.s32 1, %s386_s15   ;;  %s91_s19 = sadd.s32 1, %s382_s14 }
   0x5   : > { %s88_s20 = ssub.s32 %s386_s15, %s433_s18  ;;  %p101_p0 = scmp.ne.s32.totalorder %s382_s14, %s378_s13 }
   0x6   : > { %p89_p1 = scmp.eq.s32.totalorder %s88_s20, 0  ;;  %p102_p2 = scmp.eq.s32.totalorder %s429_s16, 1 }
   0x7   : > { %p107_p3 = scmp.ne.s32.totalorder %s378_s13, %s374_s12  ;;  %p108_p4 = scmp.eq.s32.totalorder %s273_s17, 1 }
   0x8   : > { %s444_s21 = scalar_select %p89_p1, %s382_s14, %s91_s19  }
   0x9   : > { %p446_p5 = por %p102_p2, %p101_p0  ;;  %p450_p6 = por %p108_p4, %p107_p3 }
   0xa   : > { %p276_p7 = scmp.ge.s32.totalorder %s386_s15, 1  ;;  %p139_p8 = scmp.lt.s32.totalorder %s386_s15, 3 }
   0xc   : > { %p140_p9 = pnand %p276_p7, %p139_p8 }
   0xd   : > { %p162_p10 = scmp.lt.s32.totalorder (!%p140_p9), %s429_s16, 1  ;;  %s159_s4 = sand.u32 (!%p140_p9), 1, %s378_s13  }
   0xe   : > { %143 = sbr.rel (%p140_p9) target bundleno = 155 (0x9b), region = 32  ;;  %s277_s5 = sshll.u32 (!%p140_p9), %s159_s4, 3 }
   0xf   : > { %s281_s6 = sshll.u32 (!%p140_p9), %s429_s16, 3  ;;  %s161_s17 = scalar_lea.vmem (!%p140_p9), [#allocation2], %s277_s5 }
  0x10   : > { %s209_s9 = scalar_lea.hbm (!%p140_p9), %s502_s3, %s281_s6  ;;  %s211_s19 = sshll.u32 (!%p140_p9), %s161_s17, 4  ;;  %s212_s19 = int_to_ptr.vmem [resolvable:$true] %s211_s19 }
  0x11   : > { %s213_s20 = sshll.u32 (!%p140_p9), %s209_s9, 4  ;;  %s199_s24 = scalar_lea.sflag (!%p140_p9), [#allocation3], %s159_s4  ;;  %s214_s20 = int_to_ptr.hbm [resolvable:$true] %s213_s20 }
  0x12   : > { %s344_s28 = scalar_lea.hbm (!%p140_p9), %s502_s3, 16 }
  0x13   : > { %v167_v0 = vld [vmem:[%s500_s1] sm:$0xff]  ;;  %s163_s26 = scalar_select %p162_p10, %s429_s16, 1  ;;  %vm172_vm0 = vcmask 64512   ;;  %vm196_vm1 = vcmask 785408  }
  0x14   : > { %191 = vmatpush.msra.mxu0 %v167_v0  ;;  %v323_v2 = vld [vmem:[%s501_s2] ss:$0 sm:$0xff]  ;;  %s338_s16 = sshra.s32 %s214_s20, 4  ;;  %s339_s16 = int_to_ptr.hbm [resolvable:$true] %s338_s16 }
  0x15   : > { %s278_s27 = sshll.u32 %s163_s26, 3  ;;  %s340_s25 = scalar_lea.hbm %s339_s16, 8 }
  0x16   : > { %s165_s30 = scalar_lea.vmem %s499_s0, %s278_s27  ;;  %p341_p11 = scmp.ne.s32.totalorder %s339_s16, %s340_s25 }
  0x17   : > { %v166_v1 = vld [vmem:[%s165_s30] sm:$0xff]  ;;  %p345_p0 = scmp.lt.s32.totalorder %s339_s16, %s502_s3  ;;  %p346_p1 = scmp.lt.s32.totalorder %s344_s28, %s340_s25 }
  0x18   : > { %279 = vmatmul.msk.f32.vlgmr.msra.gmra.mxu0 %vm172_vm0, %v166_v1  ;;  %p342_p12 = pnand %p341_p11, %p446_p5 }
  0x19   : > { %p347_p2 = por %p346_p1, %p345_p0 }
  0x1a   : > { %p343_p13 = pneg %p342_p12 }
  0x1c   : > { %p348_p3 = pnand %p347_p2, %p343_p13 }
  0x95   : > { %v193_v3 = vpop.f32.mrf.mxu0 }
  0x96   : > { %v194_v4 = vadd.f32 %v323_v2, %v193_v3 }
  0x98   : > { %197 = vst.msk [vmem:[%s161_s17] sm:$0xff] %vm196_vm1, %v194_v4 }
  0x99   : > { %351 = shalt.err (!%p348_p3)
}
  0x9a   : > { %284 = dma.vmem_to_hbm [thread:$0]  (%p446_p5), %s212_s19, 128, %s214_s20, %s199_s24  }
  0x9b PF: > { %p290_p4 = scmp.ge.s32.totalorder %s386_s15, 2  ;;  %s225_s4 = sand.u32 1, %s374_s12  }
  0x9c   : > { %s226_s5 = scalar_lea.sflag [#allocation3], %s225_s4 }
  0x9d   : > { %p287_p7 = pnand %p290_p4, %p450_p6 }
  0x9f   : > { %p288_p8 = pneg %p287_p7 }
  0xa1   : > { %369 = dma.done.wait (%p288_p8), %s226_s5, 128  }
  0xa2   : > { %371 = vsyncadd (%p288_p8), %s226_s5, 4294967168  ;;  %p13_p9 = scmp.ge.s32.totalorder %s433_s18, 4   ;;  %s505_s12 = smov %s378_s13 }
  0xa3   : > { %s506_s13 = smov %s382_s14  ;;  %s507_s14 = smov %s444_s21 }
  0xa4   : > { %s508_s15 = smov %s433_s18  ;;  %15 = sbr.rel (!%p13_p9) target bundleno = 3 (0x3), region = 67 }
  0xa9   :  { %232 = vsyncpa [#allocation3], 1 }
  0xaa   :  { %234 = vsyncpa [#allocation3 + $0x1], 1 }

</bundles_post_ra>
